<compile_context>
chip_gen: v7x
topology: tpu7x:2x2x1
jax: 0.10.0
libtpu: 0.0.40
codegen_flags: <defaults>
</compile_context>

<pallas_src>
import functools

import jax
import jax.numpy as jnp
from jax.experimental import pallas as pl
from jax.experimental.pallas import tpu as pltpu


def _reorg_kernel(x_ref, sel_ref, o_ref, *, cells):
    # x_ref:   (1, tr, s*w)         rows = (channel, out-row) pairs, lanes = (si, w)
    # sel_ref: (cells, s*w, ws)     one-hot width/phase selectors (tiny, resident)
    # o_ref:   (1, cells, tr, ws)   per-cell output slabs (row order preserved)
    x = x_ref[0]  # (tr, s*w), kept in input dtype (MXU runs at native rate)
    for cell in range(cells):  # cells = stride*stride, small static unrolled loop
        y = jnp.dot(
            x, sel_ref[cell], preferred_element_type=jnp.float32
        )  # (tr, ws); exact: one-hot selection with f32 accumulation
        o_ref[0, cell] = y.astype(o_ref.dtype)


def _make_selectors(stride, w, dtype):
    """S[cell, q, j] = 1 iff lane q == si*w + j*stride + sj, cell = si*stride + sj."""
    ws = w // stride
    si = jnp.arange(stride).reshape(stride, 1, 1)
    sj = jnp.arange(stride).reshape(1, stride, 1)
    j = jnp.arange(ws).reshape(1, 1, ws)
    src = (si * w + j * stride + sj).reshape(stride * stride, 1, ws)
    q = jnp.arange(stride * w).reshape(1, stride * w, 1)
    return (src == q).astype(dtype)  # (cells, s*w, ws)


def _pick_row_tile(rows):
    """Largest power-of-two (multiple of 8) row tile that divides `rows`."""
    for t in (1024, 512, 256, 128, 64, 32, 16, 8):
        if rows % t == 0:
            return t
    return rows  # not a multiple of 8: use the full dim (allowed by BlockSpec)


def reorg_pallas(x, stride):
    b, c, h, w = x.shape
    assert h % stride == 0 and w % stride == 0
    hs, ws = h // stride, w // stride
    cells = stride * stride
    rows, sw = c * hs, stride * w

    # One-hot MXU gather is exact for float dtypes (f32/bf16). Integer inputs with
    # magnitude > 2^24 would round through the float path.
    # TODO(synk): add an exact strided-copy path for integer dtypes if ever needed.
    assert jnp.issubdtype(x.dtype, jnp.floating), "reorg_pallas supports float dtypes"

    sel = _make_selectors(stride, w, x.dtype)  # built once, outside the kernel
    x_r = x.reshape(b, rows, sw)               # contiguous reshape, free

    tr = _pick_row_tile(rows)
    kernel = functools.partial(_reorg_kernel, cells=cells)

    out = pl.pallas_call(
        kernel,
        out_shape=jax.ShapeDtypeStruct((b, cells, rows, ws), x.dtype),
        grid=(b, rows // tr),
        in_specs=[
            # Row tile of the flattened image of batch bi.
            pl.BlockSpec((1, tr, sw), lambda bi, ri: (bi, ri, 0)),
            # Selectors: constant block index -> fetched once, reused across grid.
            pl.BlockSpec((cells, sw, ws), lambda bi, ri: (0, 0, 0)),
        ],
        out_specs=pl.BlockSpec((1, cells, tr, ws), lambda bi, ri: (bi, 0, ri, 0)),
        compiler_params=pltpu.CompilerParams(
            # Both grid axes write disjoint output slabs -> fully parallel.
            dimension_semantics=("parallel", "parallel")
        ),
    )(x_r, sel)

    # (b, cells, c*hs, ws) -> (b, cells*c, hs, ws): contiguous reshape, free.
    return out.reshape(b, cells * c, hs, ws)


def reorg_reference(x, stride):
    """Pure-JAX transcription of the PyTorch forward (for validation)."""
    b, c, h, w = x.shape
    hs, ws = h // stride, w // stride
    y = x.reshape(b, c, hs, stride, ws, stride)
    y = jnp.transpose(y, (0, 1, 2, 4, 3, 5))          # .transpose(3, 4)
    y = y.reshape(b, c, hs * ws, stride * stride)
    y = jnp.transpose(y, (0, 1, 3, 2))                # .transpose(2, 3)
    y = y.reshape(b, c, stride * stride, hs, ws)
    y = jnp.transpose(y, (0, 2, 1, 3, 4))             # .transpose(1, 2)
    return y.reshape(b, -1, hs, ws)


if __name__ == "__main__":
    # reorg_layer has no learnable parameters; only `stride` from __init__.
    stride = 2
    b, c, h, w = 2, 4, 16, 16

    key = jax.random.PRNGKey(0)
    x = jax.random.normal(key, (b, c, h, w), dtype=jnp.float32)

    out = reorg_pallas(x, stride)
    out = jax.block_until_ready(out)

    ref = reorg_reference(x, stride)
    assert out.shape == (b, stride * stride * c, h // stride, w // stride)
    assert bool(jnp.array_equal(out, ref)), "Pallas reorg does not match reference"

    print("KERNEL_OK")
</pallas_src>

<mosaic_0001>
module attributes {stable_mosaic.version = 11 : i64} {
  func.func @_reorg_kernel(%arg0: i32, %arg1: i32, %arg2: memref<1x32x32xf32, #tpu.memory_space<vmem>>, %arg3: memref<4x32x8xf32, #tpu.memory_space<vmem>>, %arg4: memref<1x4x32x8xf32, #tpu.memory_space<vmem>>) attributes {dimension_semantics = [#tpu.dimension_semantics<parallel>, #tpu.dimension_semantics<parallel>], iteration_bounds = array<i64: 2, 1>, scalar_prefetch = 0 : i64, scratch_operands = 0 : i64, tpu.core_type = #tpu.core_type<tc>, window_params = [{transform_indices = @transform_0, window_bounds = array<i64: 1, 32, 32>}, {pipeline_mode = #tpu.pipeline_mode<synchronous>, transform_indices = @transform_1, window_bounds = array<i64: 4, 32, 8>}, {transform_indices = @transform_2, window_bounds = array<i64: 1, 4, 32, 8>}]} {
    %c0 = arith.constant 0 : index
    %c0_0 = arith.constant 0 : index
    %c0_1 = arith.constant 0 : index
    %0 = vector.load %arg2[%c0, %c0_0, %c0_1] : memref<1x32x32xf32, #tpu.memory_space<vmem>>, vector<1x32x32xf32>
    %1 = vector.shape_cast %0 : vector<1x32x32xf32> to vector<32x32xf32>
    %c0_2 = arith.constant 0 : index
    %c0_3 = arith.constant 0 : index
    %c0_4 = arith.constant 0 : index
    %2 = vector.load %arg3[%c0_2, %c0_3, %c0_4] : memref<4x32x8xf32, #tpu.memory_space<vmem>>, vector<1x32x8xf32>
    %3 = vector.shape_cast %2 : vector<1x32x8xf32> to vector<32x8xf32>
    %cst = arith.constant dense<0.000000e+00> : vector<32x8xf32>
    %4 = tpu.matmul %1, %3, %cst {dimension_numbers = #tpu.dot_dimension_numbers<[1], [0], [0], [1], [0, 0, 1, 1], [], []>} : vector<32x32xf32>, vector<32x8xf32>, vector<32x8xf32> -> vector<32x8xf32>
    %c0_5 = arith.constant 0 : index
    %c0_6 = arith.constant 0 : index
    %c0_7 = arith.constant 0 : index
    %c0_8 = arith.constant 0 : index
    %5 = vector.load %arg4[%c0_5, %c0_6, %c0_7, %c0_8] : memref<1x4x32x8xf32, #tpu.memory_space<vmem>>, vector<1x1x32x8xf32>
    %6 = vector.shape_cast %5 : vector<1x1x32x8xf32> to vector<32x8xf32>
    %7 = vector.shape_cast %4 : vector<32x8xf32> to vector<1x1x32x8xf32>
    tpu.vector_store %arg4[%c0_5, %c0_6, %c0_7, %c0_8], %7 {strides = array<i32>} : memref<1x4x32x8xf32, #tpu.memory_space<vmem>>, vector<1x1x32x8xf32>,
    %c1 = arith.constant 1 : index
    %c0_9 = arith.constant 0 : index
    %c0_10 = arith.constant 0 : index
    %8 = vector.load %arg3[%c1, %c0_9, %c0_10] : memref<4x32x8xf32, #tpu.memory_space<vmem>>, vector<1x32x8xf32>
    %9 = vector.shape_cast %8 : vector<1x32x8xf32> to vector<32x8xf32>
    %cst_11 = arith.constant dense<0.000000e+00> : vector<32x8xf32>
    %10 = tpu.matmul %1, %9, %cst_11 {dimension_numbers = #tpu.dot_dimension_numbers<[1], [0], [0], [1], [0, 0, 1, 1], [], []>} : vector<32x32xf32>, vector<32x8xf32>, vector<32x8xf32> -> vector<32x8xf32>
    %c0_12 = arith.constant 0 : index
    %c1_13 = arith.constant 1 : index
    %c0_14 = arith.constant 0 : index
    %c0_15 = arith.constant 0 : index
    %11 = vector.load %arg4[%c0_12, %c1_13, %c0_14, %c0_15] : memref<1x4x32x8xf32, #tpu.memory_space<vmem>>, vector<1x1x32x8xf32>
    %12 = vector.shape_cast %11 : vector<1x1x32x8xf32> to vector<32x8xf32>
    %13 = vector.shape_cast %10 : vector<32x8xf32> to vector<1x1x32x8xf32>
    tpu.vector_store %arg4[%c0_12, %c1_13, %c0_14, %c0_15], %13 {strides = array<i32>} : memref<1x4x32x8xf32, #tpu.memory_space<vmem>>, vector<1x1x32x8xf32>,
    %c2 = arith.constant 2 : index
    %c0_16 = arith.constant 0 : index
    %c0_17 = arith.constant 0 : index
    %14 = vector.load %arg3[%c2, %c0_16, %c0_17] : memref<4x32x8xf32, #tpu.memory_space<vmem>>, vector<1x32x8xf32>
    %15 = vector.shape_cast %14 : vector<1x32x8xf32> to vector<32x8xf32>
    %cst_18 = arith.constant dense<0.000000e+00> : vector<32x8xf32>
    %16 = tpu.matmul %1, %15, %cst_18 {dimension_numbers = #tpu.dot_dimension_numbers<[1], [0], [0], [1], [0, 0, 1, 1], [], []>} : vector<32x32xf32>, vector<32x8xf32>, vector<32x8xf32> -> vector<32x8xf32>
    %c0_19 = arith.constant 0 : index
    %c2_20 = arith.constant 2 : index
    %c0_21 = arith.constant 0 : index
    %c0_22 = arith.constant 0 : index
    %17 = vector.load %arg4[%c0_19, %c2_20, %c0_21, %c0_22] : memref<1x4x32x8xf32, #tpu.memory_space<vmem>>, vector<1x1x32x8xf32>
    %18 = vector.shape_cast %17 : vector<1x1x32x8xf32> to vector<32x8xf32>
    %19 = vector.shape_cast %16 : vector<32x8xf32> to vector<1x1x32x8xf32>
    tpu.vector_store %arg4[%c0_19, %c2_20, %c0_21, %c0_22], %19 {strides = array<i32>} : memref<1x4x32x8xf32, #tpu.memory_space<vmem>>, vector<1x1x32x8xf32>,
    %c3 = arith.constant 3 : index
    %c0_23 = arith.constant 0 : index
    %c0_24 = arith.constant 0 : index
    %20 = vector.load %arg3[%c3, %c0_23, %c0_24] : memref<4x32x8xf32, #tpu.memory_space<vmem>>, vector<1x32x8xf32>
    %21 = vector.shape_cast %20 : vector<1x32x8xf32> to vector<32x8xf32>
    %cst_25 = arith.constant dense<0.000000e+00> : vector<32x8xf32>
    %22 = tpu.matmul %1, %21, %cst_25 {dimension_numbers = #tpu.dot_dimension_numbers<[1], [0], [0], [1], [0, 0, 1, 1], [], []>} : vector<32x32xf32>, vector<32x8xf32>, vector<32x8xf32> -> vector<32x8xf32>
    %c0_26 = arith.constant 0 : index
    %c3_27 = arith.constant 3 : index
    %c0_28 = arith.constant 0 : index
    %c0_29 = arith.constant 0 : index
    %23 = vector.load %arg4[%c0_26, %c3_27, %c0_28, %c0_29] : memref<1x4x32x8xf32, #tpu.memory_space<vmem>>, vector<1x1x32x8xf32>
    %24 = vector.shape_cast %23 : vector<1x1x32x8xf32> to vector<32x8xf32>
    %25 = vector.shape_cast %22 : vector<32x8xf32> to vector<1x1x32x8xf32>
    tpu.vector_store %arg4[%c0_26, %c3_27, %c0_28, %c0_29], %25 {strides = array<i32>} : memref<1x4x32x8xf32, #tpu.memory_space<vmem>>, vector<1x1x32x8xf32>,
    return
  }
  func.func @transform_0(%arg0: i32, %arg1: i32) -> (i32, i32, i32) {
    %c0_i32 = arith.constant 0 : i32
    %c0_i32_0 = arith.constant 0 : i32
    return %arg0, %arg1, %c0_i32 : i32, i32, i32
  }
  func.func @transform_1(%arg0: i32, %arg1: i32) -> (i32, i32, i32) {
    %c0_i32 = arith.constant 0 : i32
    %c0_i32_0 = arith.constant 0 : i32
    %c0_i32_1 = arith.constant 0 : i32
    %c0_i32_2 = arith.constant 0 : i32
    return %c0_i32, %c0_i32_0, %c0_i32_1 : i32, i32, i32
  }
  func.func @transform_2(%arg0: i32, %arg1: i32) -> (i32, i32, i32, i32) {
    %c0_i32 = arith.constant 0 : i32
    %c0_i32_0 = arith.constant 0 : i32
    %c0_i32_1 = arith.constant 0 : i32
    return %arg0, %c0_i32, %arg1, %c0_i32_0 : i32, i32, i32, i32
  }
}

</mosaic_0001>

<bundles_post_ra>
// kernel: tpu_custom_call.1
= control target key start
LH: loop header
LB: loop body
LE: loop exit
PB: predicated region body
PF: predicated region fallthrough
CT: control target
= control target key end

     0   :  { %s902_s9 = smov 0   ;;  %s904_s10 = smov 0   ;;  %s1037_s0 = inlined_call_operand.vmem [shape: f32[2,32,32], index: 0, kind: input, shape index: {}]   ;;  %s1038_s1 = inlined_call_operand.vmem [shape: f32[4,32,8], index: 1, kind: input, shape index: {}]   ;;  %s1039_s2 = inlined_call_operand.vmem [shape: f32[2,4,32,8], index: 2, kind: output, shape index: {}]  }
   0x1   :  { %s906_s11 = smov 0  }
   0x2 LB: > { %s24_s12 = sadd.s32 1, %s881_s10  ;;  %p670_p0 = scmp.ge.s32.totalorder %s885_s11, 1  ;;  %s885_s11 = sphi %s906_s11, %s12_s11   ;;  %s881_s10 = sphi %s904_s10, %s1041_s10   ;;  %s877_s9 = sphi %s902_s9, %s1040_s9  }
   0x3   : > { %p26_p1 = scmp.ge.s32.totalorder %s24_s12, 2  ;;  %p133_p2 = scmp.lt.s32.totalorder %s885_s11, 3 }
   0x5   : > { %s1043_s12 = smov (%p26_p1, %s24_s12), 0  ;;  %p134_p3 = pnand %p670_p0, %p133_p2 }
   0x6   : > { %v187_v0 = vld [vmem:[%s1038_s1] sm:$0xff] (!%p134_p3)  ;;  %v188_v1 = vld [vmem:[%s1038_s1 + $0x8] sm:$0xff] (!%p134_p3)  ;;  %p164_p4 = scmp.lt.s32.totalorder (!%p134_p3), %s877_s9, 1  ;;  %v189_v5 = vld [vmem:[%s1038_s1 + $0x10] sm:$0xff] (!%p134_p3)  ;;  %vm191_vm0 = vcmask (!%p134_p3), 261120   ;;  %vm289_vm1 = vcmask (!%p134_p3), 64512  }
   0x7   : > { %137 = sbr.rel (%p134_p3) target bundleno = 245 (0xf5), region = 28  ;;  %v679_v2 = vld [vmem:[%s1038_s1 + $0x20] sm:$0xff] (!%p134_p3)  ;;  %v807_v3 = vpack.c.bf16 (!%p134_p3), %v188_v1, %v187_v0  ;;  %v680_v4 = vld [vmem:[%s1038_s1 + $0x28] sm:$0xff] (!%p134_p3)  ;;  %v190_v6 = vld [vmem:[%s1038_s1 + $0x18] sm:$0xff] (!%p134_p3) }
   0x8   : > { %v815_v7 = vpack.c.bf16 (!%p134_p3), %v680_v4, %v679_v2  ;;  %v811_v8 = vpack.c.bf16 (!%p134_p3), %v190_v6, %v189_v5  ;;  %v681_v9 = vld [vmem:[%s1038_s1 + $0x30] sm:$0xff] (!%p134_p3)  ;;  %v682_v10 = vld [vmem:[%s1038_s1 + $0x38] sm:$0xff] (!%p134_p3)  ;;  %v691_v11 = vld [vmem:[%s1038_s1 + $0x40] sm:$0xff] (!%p134_p3) }
   0x9   : > { %808 = vmatprep.subr.bf16.mxu0 (!%p134_p3), %v807_v3  ;;  %v819_v12 = vpack.c.bf16 (!%p134_p3), %v682_v10, %v681_v9  ;;  %v692_v13 = vld [vmem:[%s1038_s1 + $0x48] sm:$0xff] (!%p134_p3)  ;;  %v703_v14 = vld [vmem:[%s1038_s1 + $0x60] sm:$0xff] (!%p134_p3)  ;;  %v693_v19 = vld [vmem:[%s1038_s1 + $0x50] sm:$0xff] (!%p134_p3) }
   0xa   : > { %v704_v15 = vld [vmem:[%s1038_s1 + $0x68] sm:$0xff] (!%p134_p3)  ;;  %816 = vmatprep.subr.bf16.mxu1 (!%p134_p3), %v815_v7  ;;  %810 = vmatpush3.bf16.msra.mxu0 (!%p134_p3), %v807_v3  ;;  %v823_v16 = vpack.c.bf16 (!%p134_p3), %v692_v13, %v691_v11  ;;  %v694_v20 = vld [vmem:[%s1038_s1 + $0x58] sm:$0xff] (!%p134_p3)  ;;  %v705_v22 = vld [vmem:[%s1038_s1 + $0x70] sm:$0xff] (!%p134_p3) }
   0xb   : > { %818 = vmatpush3.bf16.msra.mxu1 (!%p134_p3), %v815_v7  ;;  %812 = vmatprep.subr.bf16.mxu0 (!%p134_p3), %v811_v8  ;;  %v831_v18 = vpack.c.bf16 (!%p134_p3), %v704_v15, %v703_v14  ;;  %v706_v23 = vld [vmem:[%s1038_s1 + $0x78] sm:$0xff] (!%p134_p3)  ;;  %v827_v25 = vpack.c.bf16 (!%p134_p3), %v694_v20, %v693_v19 }
   0xc   : > { %820 = vmatprep.subr.bf16.mxu1 (!%p134_p3), %v819_v12  ;;  %v835_v26 = vpack.c.bf16 (!%p134_p3), %v706_v23, %v705_v22 }
   0xe   : > { %s1045_s9 = smov (!%p164_p4, %s877_s9), 1  ;;  %814 = vmatpush3.bf16.msra.mxu0 %v811_v8 }
   0xf   : > { %s717_s13 = sshll.u32 %s1045_s9, 5  ;;  %822 = vmatpush3.bf16.msra.mxu1 %v819_v12  ;;  %824 = vmatprep.subr.bf16.mxu0 %v823_v16  ;;  %s718_s25 = sshll.u32 %s1045_s9, 7 }
  0x10   : > { %s171_s16 = scalar_lea.vmem %s1037_s0, %s717_s13  ;;  %832 = vmatprep.subr.bf16.mxu1 %v831_v18  ;;  %s994_s28 = scalar_lea.vmem %s1039_s2, %s718_s25 }
  0x11   : > { %v183_v17 = vld [vmem:[%s171_s16] sm:$0xff]  ;;  %v184_v21 = vld [vmem:[%s171_s16 + $0x8] sm:$0xff]  ;;  %v185_v24 = vld [vmem:[%s171_s16 + $0x10] sm:$0xff] }
  0x12   : > { %759 = vmatprep.mubr.msk.f32.mxu0 %vm191_vm0, %v183_v17  ;;  %773 = vmatprep.mubr.msk.f32.mxu1 %vm191_vm0, %v183_v17  ;;  %v186_v27 = vld [vmem:[%s171_s16 + $0x18] sm:$0xff] }
  0x13   : > { %760 = vmatmul.mubr.msk.f32.vlgmr.msra.gmra.mrb[0].mxu0 %vm191_vm0, %v184_v21  ;;  %774 = vmatmul.mubr.msk.f32.vlgmr.msra.gmra.mrb[0].mxu1 %vm191_vm0, %v184_v21 }
  0x14   : > { %826 = vmatpush3.bf16.msra.mxu0 %v823_v16  ;;  %834 = vmatpush3.bf16.msra.mxu1 %v831_v18 }
  0x15   : > { %762 = vmatprep.mubr.msk.f32.mxu0 %vm191_vm0, %v185_v24  ;;  %776 = vmatprep.mubr.msk.f32.mxu1 %vm191_vm0, %v185_v24 }
  0x16   : > { %828 = vmatprep.subr.bf16.mxu0 %v827_v25  ;;  %836 = vmatprep.subr.bf16.mxu1 %v835_v26 }
  0x17   : > { %763 = vmatmul.mubr.msk.f32.gmra.mrb[2].mxu0 %vm191_vm0, %v186_v27  ;;  %777 = vmatmul.mubr.msk.f32.gmra.mrb[2].mxu1 %vm191_vm0, %v186_v27 }
  0x18   : > { %830 = vmatpush3.bf16.msra.mxu0 %v827_v25  ;;  %838 = vmatpush3.bf16.msra.mxu1 %v835_v26 }
  0x19   : > { %787 = vmatprep.mubr.msk.f32.mxu0 %vm191_vm0, %v183_v17  ;;  %801 = vmatprep.mubr.msk.f32.mxu1 %vm191_vm0, %v183_v17 }
  0x1b   : > { %788 = vmatmul.mubr.msk.f32.vlgmr.msra.gmra.mrb[4].mxu0 %vm191_vm0, %v184_v21  ;;  %802 = vmatmul.mubr.msk.f32.vlgmr.msra.gmra.mrb[4].mxu1 %vm191_vm0, %v184_v21 }
  0x1c   : > { %790 = vmatprep.mubr.msk.f32.mxu0 %vm191_vm0, %v185_v24  ;;  %804 = vmatprep.mubr.msk.f32.mxu1 %vm191_vm0, %v185_v24 }
  0x1f   : > { %791 = vmatmul.mubr.msk.f32.gmra.mrb[6].mxu0 %vm191_vm0, %v186_v27  ;;  %805 = vmatmul.mubr.msk.f32.gmra.mrb[6].mxu1 %vm191_vm0, %v186_v27 }
  0xe6   : > { %v761_v28 = vpop.f32.mrb[0].mxu0  ;;  %v775_v29 = vpop.f32.mrb[0].mxu1 }
  0xe7   : > { %291 = vst.msk [vmem:[%s994_s28 + $0x8] sm:$0xff] %vm289_vm1, %v761_v28  ;;  %v270_v30 = vpop.f32.mrb[1].mxu0  ;;  %688 = vst.msk [vmem:[%s994_s28 + $0x28] sm:$0xff] %vm289_vm1, %v775_v29  ;;  %v365_v31 = vpop.f32.mrb[1].mxu1 }
  0xe8   : > { %290 = vst.msk [vmem:[%s994_s28] sm:$0xff] %vm289_vm1, %v270_v30  ;;  %687 = vst.msk [vmem:[%s994_s28 + $0x20] sm:$0xff] %vm289_vm1, %v365_v31 }
  0xea   : > { %v764_v32 = vpop.f32.mrb[2].mxu0  ;;  %v778_v33 = vpop.f32.mrb[2].mxu1 }
  0xeb   : > { %293 = vst.msk [vmem:[%s994_s28 + $0x18] sm:$0xff] %vm289_vm1, %v764_v32  ;;  %v280_v34 = vpop.f32.mrb[3].mxu0  ;;  %690 = vst.msk [vmem:[%s994_s28 + $0x38] sm:$0xff] %vm289_vm1, %v778_v33  ;;  %v375_v35 = vpop.f32.mrb[3].mxu1 }
  0xec   : > { %292 = vst.msk [vmem:[%s994_s28 + $0x10] sm:$0xff] %vm289_vm1, %v280_v34  ;;  %689 = vst.msk [vmem:[%s994_s28 + $0x30] sm:$0xff] %vm289_vm1, %v375_v35 }
  0xee   : > { %v789_v36 = vpop.f32.mrb[4].mxu0  ;;  %v803_v37 = vpop.f32.mrb[4].mxu1 }
  0xef   : > { %700 = vst.msk [vmem:[%s994_s28 + $0x48] sm:$0xff] %vm289_vm1, %v789_v36  ;;  %v460_v38 = vpop.f32.mrb[5].mxu0  ;;  %712 = vst.msk [vmem:[%s994_s28 + $0x68] sm:$0xff] %vm289_vm1, %v803_v37  ;;  %v555_v39 = vpop.f32.mrb[5].mxu1 }
  0xf0   : > { %699 = vst.msk [vmem:[%s994_s28 + $0x40] sm:$0xff] %vm289_vm1, %v460_v38  ;;  %711 = vst.msk [vmem:[%s994_s28 + $0x60] sm:$0xff] %vm289_vm1, %v555_v39 }
  0xf2   : > { %v792_v40 = vpop.f32.mrb[6].mxu0  ;;  %v806_v41 = vpop.f32.mrb[6].mxu1 }
  0xf3   : > { %702 = vst.msk [vmem:[%s994_s28 + $0x58] sm:$0xff] %vm289_vm1, %v792_v40  ;;  %v470_v42 = vpop.f32.mrb[7].mxu0  ;;  %714 = vst.msk [vmem:[%s994_s28 + $0x78] sm:$0xff] %vm289_vm1, %v806_v41  ;;  %v565_v43 = vpop.f32.mrb[7].mxu1 }
  0xf4   : > { %701 = vst.msk [vmem:[%s994_s28 + $0x50] sm:$0xff] %vm289_vm1, %v470_v42  ;;  %713 = vst.msk [vmem:[%s994_s28 + $0x70] sm:$0xff] %vm289_vm1, %v565_v43 }
  0xf5 PF: > { %s12_s11 = sadd.s32 1, %s885_s11   ;;  %s1040_s9 = smov %s881_s10 }
  0xf6   : > { %p9_p5 = scmp.ge.s32.totalorder %s12_s11, 4   ;;  %s1041_s10 = smov %s1043_s12 }
  0xf8   :  { %11 = sbr.rel (!%p9_p5) target bundleno = 2 (0x2), region = 64 }

</bundles_post_ra>
